<compile_context>
chip_gen: v7x
topology: tpu7x:2x2x1
jax: 0.10.0
libtpu: 0.0.40
codegen_flags: <defaults>
</compile_context>

<pallas_src>
import functools

import jax
import jax.numpy as jnp
from jax import lax
from jax.experimental import pallas as pl
from jax.experimental.pallas import tpu as pltpu


def _feature_map(x):
    # elu(x) + 1  ==  x + 1 (x > 0)  |  exp(x) (x <= 0); clamp exp arg for safety.
    return jnp.where(x > 0.0, x + 1.0, jnp.exp(jnp.minimum(x, 0.0)))


def _linear_attention_kernel(q_ref, k_ref, v_ref, o_ref, *, n_heads, d_key, d_value, eps):
    # q_ref: (L, H*D), k_ref: (S, H*D), v_ref: (S, H*M), o_ref: (L, H*M)   (batch squeezed)
    outs = []
    for h in range(n_heads):  # small static head count -> unrolled
        qh = _feature_map(q_ref[:, h * d_key:(h + 1) * d_key])      # (L, D)
        kh = _feature_map(k_ref[:, h * d_key:(h + 1) * d_key])      # (S, D)
        vh = v_ref[:, h * d_value:(h + 1) * d_value]                 # (S, M)

        # KV[d, m] = sum_s kh[s, d] * vh[s, m]  (transposed-lhs contraction, no .T)
        kv = lax.dot_general(kh, vh, (((0,), (0,)), ((), ())),
                             preferred_element_type=jnp.float32)     # (D, M)

        # denom[l] = sum_d qh[l, d] * (sum_s kh[s, d]) + eps
        ksum = jnp.sum(kh, axis=0, keepdims=True)                    # (1, D)
        denom = jnp.sum(qh * ksum, axis=-1, keepdims=True) + eps     # (L, 1)

        # ctx[l, m] = sum_d qh[l, d] * kv[d, m]
        ctx = lax.dot_general(qh, kv, (((1,), (0,)), ((), ())),
                              preferred_element_type=jnp.float32)    # (L, M)

        # Normalize once on the (L, M) context (reciprocal-multiply, exact).
        outs.append(ctx * pl.reciprocal(denom, approx=False))

    # Single lane-dense store of the full (L, H*M) block.
    o_ref[...] = jnp.concatenate(outs, axis=-1).astype(o_ref.dtype)


def linear_attention(queries, keys, values, eps=1e-6):
    """queries: (N, L, H, D), keys: (N, S, H, D), values: (N, S, H, M) -> (N, L, H, M)."""
    N, L, H, D = queries.shape
    _, S, _, _ = keys.shape
    M = values.shape[-1]

    # Free, contiguous reshapes (no transposes / HBM relayouts).
    q2 = queries.reshape(N, L, H * D)
    k2 = keys.reshape(N, S, H * D)
    v2 = values.reshape(N, S, H * M)

    kernel = functools.partial(
        _linear_attention_kernel, n_heads=H, d_key=D, d_value=M, eps=float(eps))

    flops = int(
        2 * N * H * S * D * M      # KV
        + 2 * N * H * L * D        # denom
        + 2 * N * H * L * D * M    # context
        + 2 * N * H * D * (L + S)  # feature maps (approx)
    )
    transcendentals = int(N * H * D * (L + S))  # exp in elu
    bytes_accessed = int(4 * (N * L * H * D + N * S * H * D + N * S * H * M + N * L * H * M))

    out = pl.pallas_call(
        kernel,
        out_shape=jax.ShapeDtypeStruct((N, L, H * M), jnp.float32),
        grid=(N,),
        in_specs=[
            pl.BlockSpec((pl.Squeezed(), L, H * D), lambda n: (n, 0, 0)),
            pl.BlockSpec((pl.Squeezed(), S, H * D), lambda n: (n, 0, 0)),
            pl.BlockSpec((pl.Squeezed(), S, H * M), lambda n: (n, 0, 0)),
        ],
        out_specs=pl.BlockSpec((pl.Squeezed(), L, H * M), lambda n: (n, 0, 0)),
        compiler_params=pltpu.CompilerParams(dimension_semantics=("parallel",)),
        cost_estimate=pl.CostEstimate(
            flops=flops, transcendentals=transcendentals, bytes_accessed=bytes_accessed),
    )(q2, k2, v2)

    return out.reshape(N, L, H, M)


def linear_attention_ref(queries, keys, values, eps=1e-6):
    """Pure-JAX reference mirroring the PyTorch module."""
    fm = lambda x: jax.nn.elu(x) + 1.0
    Q = fm(queries)
    K = fm(keys)
    hi = jax.lax.Precision.HIGHEST
    KV = jnp.einsum('nshd,nshm->nhmd', K, values, precision=hi)
    Z = 1.0 / (jnp.einsum('nlhd,nhd->nlh', Q, K.sum(axis=1), precision=hi) + eps)
    return jnp.einsum('nlhd,nhmd,nlh->nlhm', Q, KV, Z, precision=hi)


if __name__ == "__main__":
    key = jax.random.PRNGKey(0)
    N, L, S, H, D, M = 2, 8, 8, 4, 8, 8

    kq, kk, kv = jax.random.split(key, 3)
    queries = jax.random.normal(kq, (N, L, H, D), jnp.float32)
    keys = jax.random.normal(kk, (N, S, H, D), jnp.float32)
    values = jax.random.normal(kv, (N, S, H, M), jnp.float32)

    out = linear_attention(queries, keys, values)
    out = jax.block_until_ready(out)
    assert out.shape == (N, L, H, M)

    ref = linear_attention_ref(queries, keys, values)
    max_err = float(jnp.max(jnp.abs(out - ref)))
    assert jnp.allclose(out, ref, rtol=2e-2, atol=2e-2), f"max abs err = {max_err}"

    print("KERNEL_OK")
</pallas_src>

<mosaic_0001>
module attributes {stable_mosaic.version = 11 : i64} {
  func.func @_linear_attention_kernel(%arg0: i32, %arg1: memref<1x8x32xf32, #tpu.memory_space<vmem>>, %arg2: memref<1x8x32xf32, #tpu.memory_space<vmem>>, %arg3: memref<1x8x32xf32, #tpu.memory_space<vmem>>, %arg4: memref<1x8x32xf32, #tpu.memory_space<vmem>>) attributes {dimension_semantics = [#tpu.dimension_semantics<parallel>], iteration_bounds = array<i64: 2>, scalar_prefetch = 0 : i64, scratch_operands = 0 : i64, tpu.core_type = #tpu.core_type<tc>, window_params = [{transform_indices = @transform_0, window_bounds = array<i64: 1, 8, 32>}, {transform_indices = @transform_1, window_bounds = array<i64: 1, 8, 32>}, {transform_indices = @transform_2, window_bounds = array<i64: 1, 8, 32>}, {transform_indices = @transform_3, window_bounds = array<i64: 1, 8, 32>}]} {
    %c0 = arith.constant 0 : index
    %c0_0 = arith.constant 0 : index
    %c0_1 = arith.constant 0 : index
    %0 = vector.load %arg1[%c0, %c0_0, %c0_1] : memref<1x8x32xf32, #tpu.memory_space<vmem>>, vector<1x8x8xf32>
    %1 = vector.shape_cast %0 : vector<1x8x8xf32> to vector<8x8xf32>
    %cst = arith.constant 0.000000e+00 : f32
    %2 = vector.broadcast %cst : f32 to vector<8x8xf32>
    %3 = arith.cmpf ogt, %1, %2 : vector<8x8xf32>
    %cst_2 = arith.constant 1.000000e+00 : f32
    %4 = vector.broadcast %cst_2 : f32 to vector<8x8xf32>
    %5 = arith.addf %1, %4 : vector<8x8xf32>
    %cst_3 = arith.constant 0.000000e+00 : f32
    %6 = vector.broadcast %cst_3 : f32 to vector<8x8xf32>
    %7 = arith.minimumf %1, %6 : vector<8x8xf32>
    %8 = math.exp %7 : vector<8x8xf32>
    %9 = arith.select %3, %5, %8 : vector<8x8xi1>, vector<8x8xf32>
    %c0_4 = arith.constant 0 : index
    %c0_5 = arith.constant 0 : index
    %c0_6 = arith.constant 0 : index
    %10 = vector.load %arg2[%c0_4, %c0_5, %c0_6] : memref<1x8x32xf32, #tpu.memory_space<vmem>>, vector<1x8x8xf32>
    %11 = vector.shape_cast %10 : vector<1x8x8xf32> to vector<8x8xf32>
    %cst_7 = arith.constant 0.000000e+00 : f32
    %12 = vector.broadcast %cst_7 : f32 to vector<8x8xf32>
    %13 = arith.cmpf ogt, %11, %12 : vector<8x8xf32>
    %cst_8 = arith.constant 1.000000e+00 : f32
    %14 = vector.broadcast %cst_8 : f32 to vector<8x8xf32>
    %15 = arith.addf %11, %14 : vector<8x8xf32>
    %cst_9 = arith.constant 0.000000e+00 : f32
    %16 = vector.broadcast %cst_9 : f32 to vector<8x8xf32>
    %17 = arith.minimumf %11, %16 : vector<8x8xf32>
    %18 = math.exp %17 : vector<8x8xf32>
    %19 = arith.select %13, %15, %18 : vector<8x8xi1>, vector<8x8xf32>
    %c0_10 = arith.constant 0 : index
    %c0_11 = arith.constant 0 : index
    %c0_12 = arith.constant 0 : index
    %20 = vector.load %arg3[%c0_10, %c0_11, %c0_12] : memref<1x8x32xf32, #tpu.memory_space<vmem>>, vector<1x8x8xf32>
    %21 = vector.shape_cast %20 : vector<1x8x8xf32> to vector<8x8xf32>
    %cst_13 = arith.constant dense<0.000000e+00> : vector<8x8xf32>
    %22 = tpu.matmul %19, %21, %cst_13 {dimension_numbers = #tpu.dot_dimension_numbers<[0], [0], [1], [1], [0, 1, 1, 1], [], []>} : vector<8x8xf32>, vector<8x8xf32>, vector<8x8xf32> -> vector<8x8xf32>
    %cst_14 = arith.constant dense<0.000000e+00> : vector<8xf32>
    %23 = vector.multi_reduction <add>, %19, %cst_14 [0] : vector<8x8xf32> to vector<8xf32>
    %24 = vector.shape_cast %23 : vector<8xf32> to vector<1x8xf32>
    %25 = vector.broadcast %24 : vector<1x8xf32> to vector<8x8xf32>
    %26 = arith.mulf %9, %25 : vector<8x8xf32>
    %cst_15 = arith.constant dense<0.000000e+00> : vector<8xf32>
    %27 = vector.multi_reduction <add>, %26, %cst_15 [1] : vector<8x8xf32> to vector<8xf32>
    %28 = vector.shape_cast %27 : vector<8xf32> to vector<8x1xf32>
    %cst_16 = arith.constant 9.99999997E-7 : f32
    %29 = vector.broadcast %cst_16 : f32 to vector<8x1xf32>
    %30 = arith.addf %28, %29 : vector<8x1xf32>
    %cst_17 = arith.constant dense<0.000000e+00> : vector<8x8xf32>
    %31 = tpu.matmul %9, %22, %cst_17 {dimension_numbers = #tpu.dot_dimension_numbers<[1], [0], [0], [1], [0, 0, 1, 1], [], []>} : vector<8x8xf32>, vector<8x8xf32>, vector<8x8xf32> -> vector<8x8xf32>
    %32 = tpu.reciprocal %30 : vector<8x1xf32> -> vector<8x1xf32>
    %33 = vector.broadcast %32 : vector<8x1xf32> to vector<8x8xf32>
    %34 = arith.mulf %31, %33 : vector<8x8xf32>
    %c0_18 = arith.constant 0 : index
    %c0_19 = arith.constant 0 : index
    %c8 = arith.constant 8 : index
    %35 = vector.load %arg1[%c0_18, %c0_19, %c8] : memref<1x8x32xf32, #tpu.memory_space<vmem>>, vector<1x8x8xf32>
    %36 = vector.shape_cast %35 : vector<1x8x8xf32> to vector<8x8xf32>
    %cst_20 = arith.constant 0.000000e+00 : f32
    %37 = vector.broadcast %cst_20 : f32 to vector<8x8xf32>
    %38 = arith.cmpf ogt, %36, %37 : vector<8x8xf32>
    %cst_21 = arith.constant 1.000000e+00 : f32
    %39 = vector.broadcast %cst_21 : f32 to vector<8x8xf32>
    %40 = arith.addf %36, %39 : vector<8x8xf32>
    %cst_22 = arith.constant 0.000000e+00 : f32
    %41 = vector.broadcast %cst_22 : f32 to vector<8x8xf32>
    %42 = arith.minimumf %36, %41 : vector<8x8xf32>
    %43 = math.exp %42 : vector<8x8xf32>
    %44 = arith.select %38, %40, %43 : vector<8x8xi1>, vector<8x8xf32>
    %c0_23 = arith.constant 0 : index
    %c0_24 = arith.constant 0 : index
    %c8_25 = arith.constant 8 : index
    %45 = vector.load %arg2[%c0_23, %c0_24, %c8_25] : memref<1x8x32xf32, #tpu.memory_space<vmem>>, vector<1x8x8xf32>
    %46 = vector.shape_cast %45 : vector<1x8x8xf32> to vector<8x8xf32>
    %cst_26 = arith.constant 0.000000e+00 : f32
    %47 = vector.broadcast %cst_26 : f32 to vector<8x8xf32>
    %48 = arith.cmpf ogt, %46, %47 : vector<8x8xf32>
    %cst_27 = arith.constant 1.000000e+00 : f32
    %49 = vector.broadcast %cst_27 : f32 to vector<8x8xf32>
    %50 = arith.addf %46, %49 : vector<8x8xf32>
    %cst_28 = arith.constant 0.000000e+00 : f32
    %51 = vector.broadcast %cst_28 : f32 to vector<8x8xf32>
    %52 = arith.minimumf %46, %51 : vector<8x8xf32>
    %53 = math.exp %52 : vector<8x8xf32>
    %54 = arith.select %48, %50, %53 : vector<8x8xi1>, vector<8x8xf32>
    %c0_29 = arith.constant 0 : index
    %c0_30 = arith.constant 0 : index
    %c8_31 = arith.constant 8 : index
    %55 = vector.load %arg3[%c0_29, %c0_30, %c8_31] : memref<1x8x32xf32, #tpu.memory_space<vmem>>, vector<1x8x8xf32>
    %56 = vector.shape_cast %55 : vector<1x8x8xf32> to vector<8x8xf32>
    %cst_32 = arith.constant dense<0.000000e+00> : vector<8x8xf32>
    %57 = tpu.matmul %54, %56, %cst_32 {dimension_numbers = #tpu.dot_dimension_numbers<[0], [0], [1], [1], [0, 1, 1, 1], [], []>} : vector<8x8xf32>, vector<8x8xf32>, vector<8x8xf32> -> vector<8x8xf32>
    %cst_33 = arith.constant dense<0.000000e+00> : vector<8xf32>
    %58 = vector.multi_reduction <add>, %54, %cst_33 [0] : vector<8x8xf32> to vector<8xf32>
    %59 = vector.shape_cast %58 : vector<8xf32> to vector<1x8xf32>
    %60 = vector.broadcast %59 : vector<1x8xf32> to vector<8x8xf32>
    %61 = arith.mulf %44, %60 : vector<8x8xf32>
    %cst_34 = arith.constant dense<0.000000e+00> : vector<8xf32>
    %62 = vector.multi_reduction <add>, %61, %cst_34 [1] : vector<8x8xf32> to vector<8xf32>
    %63 = vector.shape_cast %62 : vector<8xf32> to vector<8x1xf32>
    %cst_35 = arith.constant 9.99999997E-7 : f32
    %64 = vector.broadcast %cst_35 : f32 to vector<8x1xf32>
    %65 = arith.addf %63, %64 : vector<8x1xf32>
    %cst_36 = arith.constant dense<0.000000e+00> : vector<8x8xf32>
    %66 = tpu.matmul %44, %57, %cst_36 {dimension_numbers = #tpu.dot_dimension_numbers<[1], [0], [0], [1], [0, 0, 1, 1], [], []>} : vector<8x8xf32>, vector<8x8xf32>, vector<8x8xf32> -> vector<8x8xf32>
    %67 = tpu.reciprocal %65 : vector<8x1xf32> -> vector<8x1xf32>
    %68 = vector.broadcast %67 : vector<8x1xf32> to vector<8x8xf32>
    %69 = arith.mulf %66, %68 : vector<8x8xf32>
    %c0_37 = arith.constant 0 : index
    %c0_38 = arith.constant 0 : index
    %c16 = arith.constant 16 : index
    %70 = vector.load %arg1[%c0_37, %c0_38, %c16] : memref<1x8x32xf32, #tpu.memory_space<vmem>>, vector<1x8x8xf32>
    %71 = vector.shape_cast %70 : vector<1x8x8xf32> to vector<8x8xf32>
    %cst_39 = arith.constant 0.000000e+00 : f32
    %72 = vector.broadcast %cst_39 : f32 to vector<8x8xf32>
    %73 = arith.cmpf ogt, %71, %72 : vector<8x8xf32>
    %cst_40 = arith.constant 1.000000e+00 : f32
    %74 = vector.broadcast %cst_40 : f32 to vector<8x8xf32>
    %75 = arith.addf %71, %74 : vector<8x8xf32>
    %cst_41 = arith.constant 0.000000e+00 : f32
    %76 = vector.broadcast %cst_41 : f32 to vector<8x8xf32>
    %77 = arith.minimumf %71, %76 : vector<8x8xf32>
    %78 = math.exp %77 : vector<8x8xf32>
    %79 = arith.select %73, %75, %78 : vector<8x8xi1>, vector<8x8xf32>
    %c0_42 = arith.constant 0 : index
    %c0_43 = arith.constant 0 : index
    %c16_44 = arith.constant 16 : index
    %80 = vector.load %arg2[%c0_42, %c0_43, %c16_44] : memref<1x8x32xf32, #tpu.memory_space<vmem>>, vector<1x8x8xf32>
    %81 = vector.shape_cast %80 : vector<1x8x8xf32> to vector<8x8xf32>
    %cst_45 = arith.constant 0.000000e+00 : f32
    %82 = vector.broadcast %cst_45 : f32 to vector<8x8xf32>
    %83 = arith.cmpf ogt, %81, %82 : vector<8x8xf32>
    %cst_46 = arith.constant 1.000000e+00 : f32
    %84 = vector.broadcast %cst_46 : f32 to vector<8x8xf32>
    %85 = arith.addf %81, %84 : vector<8x8xf32>
    %cst_47 = arith.constant 0.000000e+00 : f32
    %86 = vector.broadcast %cst_47 : f32 to vector<8x8xf32>
    %87 = arith.minimumf %81, %86 : vector<8x8xf32>
    %88 = math.exp %87 : vector<8x8xf32>
    %89 = arith.select %83, %85, %88 : vector<8x8xi1>, vector<8x8xf32>
    %c0_48 = arith.constant 0 : index
    %c0_49 = arith.constant 0 : index
    %c16_50 = arith.constant 16 : index
    %90 = vector.load %arg3[%c0_48, %c0_49, %c16_50] : memref<1x8x32xf32, #tpu.memory_space<vmem>>, vector<1x8x8xf32>
    %91 = vector.shape_cast %90 : vector<1x8x8xf32> to vector<8x8xf32>
    %cst_51 = arith.constant dense<0.000000e+00> : vector<8x8xf32>
    %92 = tpu.matmul %89, %91, %cst_51 {dimension_numbers = #tpu.dot_dimension_numbers<[0], [0], [1], [1], [0, 1, 1, 1], [], []>} : vector<8x8xf32>, vector<8x8xf32>, vector<8x8xf32> -> vector<8x8xf32>
    %cst_52 = arith.constant dense<0.000000e+00> : vector<8xf32>
    %93 = vector.multi_reduction <add>, %89, %cst_52 [0] : vector<8x8xf32> to vector<8xf32>
    %94 = vector.shape_cast %93 : vector<8xf32> to vector<1x8xf32>
    %95 = vector.broadcast %94 : vector<1x8xf32> to vector<8x8xf32>
    %96 = arith.mulf %79, %95 : vector<8x8xf32>
    %cst_53 = arith.constant dense<0.000000e+00> : vector<8xf32>
    %97 = vector.multi_reduction <add>, %96, %cst_53 [1] : vector<8x8xf32> to vector<8xf32>
    %98 = vector.shape_cast %97 : vector<8xf32> to vector<8x1xf32>
    %cst_54 = arith.constant 9.99999997E-7 : f32
    %99 = vector.broadcast %cst_54 : f32 to vector<8x1xf32>
    %100 = arith.addf %98, %99 : vector<8x1xf32>
    %cst_55 = arith.constant dense<0.000000e+00> : vector<8x8xf32>
    %101 = tpu.matmul %79, %92, %cst_55 {dimension_numbers = #tpu.dot_dimension_numbers<[1], [0], [0], [1], [0, 0, 1, 1], [], []>} : vector<8x8xf32>, vector<8x8xf32>, vector<8x8xf32> -> vector<8x8xf32>
    %102 = tpu.reciprocal %100 : vector<8x1xf32> -> vector<8x1xf32>
    %103 = vector.broadcast %102 : vector<8x1xf32> to vector<8x8xf32>
    %104 = arith.mulf %101, %103 : vector<8x8xf32>
    %c0_56 = arith.constant 0 : index
    %c0_57 = arith.constant 0 : index
    %c24 = arith.constant 24 : index
    %105 = vector.load %arg1[%c0_56, %c0_57, %c24] : memref<1x8x32xf32, #tpu.memory_space<vmem>>, vector<1x8x8xf32>
    %106 = vector.shape_cast %105 : vector<1x8x8xf32> to vector<8x8xf32>
    %cst_58 = arith.constant 0.000000e+00 : f32
    %107 = vector.broadcast %cst_58 : f32 to vector<8x8xf32>
    %108 = arith.cmpf ogt, %106, %107 : vector<8x8xf32>
    %cst_59 = arith.constant 1.000000e+00 : f32
    %109 = vector.broadcast %cst_59 : f32 to vector<8x8xf32>
    %110 = arith.addf %106, %109 : vector<8x8xf32>
    %cst_60 = arith.constant 0.000000e+00 : f32
    %111 = vector.broadcast %cst_60 : f32 to vector<8x8xf32>
    %112 = arith.minimumf %106, %111 : vector<8x8xf32>
    %113 = math.exp %112 : vector<8x8xf32>
    %114 = arith.select %108, %110, %113 : vector<8x8xi1>, vector<8x8xf32>
    %c0_61 = arith.constant 0 : index
    %c0_62 = arith.constant 0 : index
    %c24_63 = arith.constant 24 : index
    %115 = vector.load %arg2[%c0_61, %c0_62, %c24_63] : memref<1x8x32xf32, #tpu.memory_space<vmem>>, vector<1x8x8xf32>
    %116 = vector.shape_cast %115 : vector<1x8x8xf32> to vector<8x8xf32>
    %cst_64 = arith.constant 0.000000e+00 : f32
    %117 = vector.broadcast %cst_64 : f32 to vector<8x8xf32>
    %118 = arith.cmpf ogt, %116, %117 : vector<8x8xf32>
    %cst_65 = arith.constant 1.000000e+00 : f32
    %119 = vector.broadcast %cst_65 : f32 to vector<8x8xf32>
    %120 = arith.addf %116, %119 : vector<8x8xf32>
    %cst_66 = arith.constant 0.000000e+00 : f32
    %121 = vector.broadcast %cst_66 : f32 to vector<8x8xf32>
    %122 = arith.minimumf %116, %121 : vector<8x8xf32>
    %123 = math.exp %122 : vector<8x8xf32>
    %124 = arith.select %118, %120, %123 : vector<8x8xi1>, vector<8x8xf32>
    %c0_67 = arith.constant 0 : index
    %c0_68 = arith.constant 0 : index
    %c24_69 = arith.constant 24 : index
    %125 = vector.load %arg3[%c0_67, %c0_68, %c24_69] : memref<1x8x32xf32, #tpu.memory_space<vmem>>, vector<1x8x8xf32>
    %126 = vector.shape_cast %125 : vector<1x8x8xf32> to vector<8x8xf32>
    %cst_70 = arith.constant dense<0.000000e+00> : vector<8x8xf32>
    %127 = tpu.matmul %124, %126, %cst_70 {dimension_numbers = #tpu.dot_dimension_numbers<[0], [0], [1], [1], [0, 1, 1, 1], [], []>} : vector<8x8xf32>, vector<8x8xf32>, vector<8x8xf32> -> vector<8x8xf32>
    %cst_71 = arith.constant dense<0.000000e+00> : vector<8xf32>
    %128 = vector.multi_reduction <add>, %124, %cst_71 [0] : vector<8x8xf32> to vector<8xf32>
    %129 = vector.shape_cast %128 : vector<8xf32> to vector<1x8xf32>
    %130 = vector.broadcast %129 : vector<1x8xf32> to vector<8x8xf32>
    %131 = arith.mulf %114, %130 : vector<8x8xf32>
    %cst_72 = arith.constant dense<0.000000e+00> : vector<8xf32>
    %132 = vector.multi_reduction <add>, %131, %cst_72 [1] : vector<8x8xf32> to vector<8xf32>
    %133 = vector.shape_cast %132 : vector<8xf32> to vector<8x1xf32>
    %cst_73 = arith.constant 9.99999997E-7 : f32
    %134 = vector.broadcast %cst_73 : f32 to vector<8x1xf32>
    %135 = arith.addf %133, %134 : vector<8x1xf32>
    %cst_74 = arith.constant dense<0.000000e+00> : vector<8x8xf32>
    %136 = tpu.matmul %114, %127, %cst_74 {dimension_numbers = #tpu.dot_dimension_numbers<[1], [0], [0], [1], [0, 0, 1, 1], [], []>} : vector<8x8xf32>, vector<8x8xf32>, vector<8x8xf32> -> vector<8x8xf32>
    %137 = tpu.reciprocal %135 : vector<8x1xf32> -> vector<8x1xf32>
    %138 = vector.broadcast %137 : vector<8x1xf32> to vector<8x8xf32>
    %139 = arith.mulf %136, %138 : vector<8x8xf32>
    %140 = tpu.concatenate %34, %69, %104, %139 in 1 : vector<8x8xf32>, vector<8x8xf32>, vector<8x8xf32>, vector<8x8xf32> -> vector<8x32xf32>
    %c0_75 = arith.constant 0 : index
    %c0_76 = arith.constant 0 : index
    %c0_77 = arith.constant 0 : index
    %141 = vector.load %arg4[%c0_75, %c0_76, %c0_77] : memref<1x8x32xf32, #tpu.memory_space<vmem>>, vector<1x8x32xf32>
    %142 = vector.shape_cast %141 : vector<1x8x32xf32> to vector<8x32xf32>
    %143 = vector.shape_cast %140 : vector<8x32xf32> to vector<1x8x32xf32>
    tpu.vector_store %arg4[%c0_75, %c0_76, %c0_77], %143 {strides = array<i32>} : memref<1x8x32xf32, #tpu.memory_space<vmem>>, vector<1x8x32xf32>,
    return
  }
  func.func @transform_0(%arg0: i32) -> (i32, i32, i32) {
    %c0_i32 = arith.constant 0 : i32
    %c0_i32_0 = arith.constant 0 : i32
    %c0_i32_1 = arith.constant 0 : i32
    return %arg0, %c0_i32, %c0_i32_0 : i32, i32, i32
  }
  func.func @transform_1(%arg0: i32) -> (i32, i32, i32) {
    %c0_i32 = arith.constant 0 : i32
    %c0_i32_0 = arith.constant 0 : i32
    %c0_i32_1 = arith.constant 0 : i32
    return %arg0, %c0_i32, %c0_i32_0 : i32, i32, i32
  }
  func.func @transform_2(%arg0: i32) -> (i32, i32, i32) {
    %c0_i32 = arith.constant 0 : i32
    %c0_i32_0 = arith.constant 0 : i32
    %c0_i32_1 = arith.constant 0 : i32
    return %arg0, %c0_i32, %c0_i32_0 : i32, i32, i32
  }
  func.func @transform_3(%arg0: i32) -> (i32, i32, i32) {
    %c0_i32 = arith.constant 0 : i32
    %c0_i32_0 = arith.constant 0 : i32
    %c0_i32_1 = arith.constant 0 : i32
    return %arg0, %c0_i32, %c0_i32_0 : i32, i32, i32
  }
}

</mosaic_0001>

<bundles_post_ra>
// kernel: tpu_custom_call.1
= control target key start
LH: loop header
LB: loop body
LE: loop exit
PB: predicated region body
PF: predicated region fallthrough
CT: control target
= control target key end

     0   :  { %s1884_s0 = inlined_call_operand.hbm [shape: f32[2,8,32], index: 0, kind: input, shape index: {}]   ;;  %s1885_s1 = inlined_call_operand.hbm [shape: f32[2,8,32], index: 1, kind: input, shape index: {}]   ;;  %s1886_s2 = inlined_call_operand.hbm [shape: f32[2,8,32], index: 2, kind: input, shape index: {}]   ;;  %s1887_s3 = inlined_call_operand.hbm [shape: f32[2,8,32], index: 3, kind: output, shape index: {}]  }
   0x1   :  { %1892 = sst [smem:[#allocation12_spill]] %s1885_s1 }
   0x2   :  { %8 = vsyncpa [#allocation3], 0 }
   0x3   :  { %10 = vsyncpa [#allocation3 + $0x1], 0 }
   0x4   :  { %11 = vsyncpa [#allocation6], 0 }
   0x5   :  { %13 = vsyncpa [#allocation6 + $0x1], 0 }
   0x6   :  { %14 = vsyncpa [#allocation4], 0 }
   0x7   :  { %16 = vsyncpa [#allocation4 + $0x1], 0  ;;  %s1577_s12 = smov 0   ;;  %s1579_s13 = smov 0  }
   0x8   :  { %s1581_s14 = smov 0   ;;  %s1583_s15 = smov 0  }
   0x9 LB: > { %s1598_s16 = sadd.s32 4294967295, %s1543_s15   ;;  %s1225_s17 = sadd.s32 4294967294, %s1543_s15   ;;  %s1543_s15 = sphi %s1583_s15, %s1911_s15   ;;  %s1539_s14 = sphi %s1581_s14, %s1910_s14   ;;  %s1535_s13 = sphi %s1579_s13, %s1909_s13   ;;  %s1531_s12 = sphi %s1577_s12, %s1908_s12  }
   0xa   : > { %s1602_s18 = sadd.s32 1, %s1543_s15   ;;  %s29_s19 = sadd.s32 1, %s1539_s14 }
   0xb   : > { %s26_s20 = ssub.s32 %s1543_s15, %s1602_s18  ;;  %p36_p0 = scmp.ne.s32.totalorder %s1539_s14, %s1535_s13 }
   0xc   : > { %p27_p1 = scmp.eq.s32.totalorder %s26_s20, 0  ;;  %p37_p2 = scmp.eq.s32.totalorder %s1543_s15, 0 }
   0xd   : > { %p42_p3 = scmp.ne.s32.totalorder %s1535_s13, %s1531_s12  ;;  %p43_p4 = scmp.eq.s32.totalorder %s1598_s16, 0 }
   0xe   : > { %s1614_s21 = scalar_select %p27_p1, %s1539_s14, %s29_s19  }
   0xf   : > { %p38_p5 = por %p37_p2, %p36_p0  ;;  %p1616_p6 = por %p43_p4, %p42_p3 }
  0x10   : > { %p118_p7 = scmp.eq.s32.totalorder %s1598_s16, 1  ;;  %p124_p8 = scmp.eq.s32.totalorder %s1225_s17, 1 }
  0x11   : > { %s1893_s22 = scalar_select %p1616_p6, 1, 0 }
  0x12   : > { %p1329_p10 = scmp.lt.s32.totalorder %s1543_s15, 2  ;;  %p1623_p11 = por %p118_p7, %p36_p0 }
  0x13   : > { %p1627_p12 = por %p124_p8, %p42_p3  ;;  %s144_s25 = sand.u32 1, %s1539_s14  }
  0x14   : > { %s1894_s23 = scalar_select %p1623_p11, 1, 0 }
  0x15   : > { %s1895_s24 = scalar_select %p1627_p12, 1, 0 }
  0x16   : > { %s1633_s26 = sshll.u32 %s1543_s15, 7  ;;  %s1637_s27 = sshll.u32 %s144_s25, 3 }
  0x17   : > { %p1639_p13 = pnand %p1329_p10, %p38_p5  ;;  %s162_s29 = sand.u32 1, %s1543_s15  }
  0x18   : > { %s1897_s1 = sld [smem:[#allocation12_spill]]  ;;  %s166_s6 = scalar_lea.vmem [#allocation5], %s1637_s27 }
  0x19   : > { %s1896_s28 = scalar_select %p1639_p13, 1, 0 }
  0x1a   : > { %s173_s7 = sshll.u32 %s166_s6, 4  ;;  %s1654_s8 = scalar_lea.sflag [#allocation6], %s162_s29  ;;  %s1651_s7 = int_to_ptr.vmem [resolvable:$true] %s173_s7 }
  0x1b   : > { %p1660_p2 = pneg %p1639_p13 }
  0x1e   : > { %s1648_s5 = scalar_lea.hbm %s1897_s1, %s1633_s26  ;;  %s1388_s19 = scalar_lea.hbm %s1897_s1, 256 }
  0x1f   : > { %s1383_s9 = scalar_lea.hbm %s1648_s5, 128  ;;  %p1389_p5 = scmp.lt.u32.totalorder %s1648_s5, %s1897_s1 }
  0x20   : > { %p1384_p1 = scmp.ne.s32.totalorder %s1648_s5, %s1383_s9  ;;  %p1390_p7 = scmp.lt.u32.totalorder %s1388_s19, %s1383_s9 }
  0x21   : > { %p1392_p10 = scmp.lt.u32.totalorder %s1383_s9, %s1648_s5 }
  0x22   : > { %p1386_p3 = pnand %p1660_p2, %p1384_p1  ;;  %p1391_p8 = por %p1390_p7, %p1389_p5 }
  0x24   : > { %p1387_p4 = pneg %p1386_p3  ;;  %p1393_p9 = por %p1392_p10, %p1391_p8 }
  0x26   : > { %p1394_p0 = pnand %p1393_p9, %p1387_p4 }
  0x28   : > { %1397 = shalt.err (!%p1394_p0)
}
  0x29   : > { %s1398_s29 = scalar_lea.vmem %s1651_s7, 128  ;;  %s1545_s4 = smov [#allocation5]  }
  0x2a   : > { %p1399_p1 = scmp.ne.s32.totalorder %s1651_s7, %s1398_s29  ;;  %s1403_s6 = sshll.u32 %s1545_s4, 4  ;;  %s1404_s6 = int_to_ptr.vmem [resolvable:$false] %s1403_s6 }
  0x2b   : > { %s1405_s11 = scalar_lea.vmem %s1404_s6, 256  ;;  %p1406_p11 = scmp.lt.s32.totalorder %s1651_s7, %s1404_s6 }
  0x2c   : > { %p1401_p3 = pnand %p1399_p1, %p1660_p2  ;;  %p1407_p6 = scmp.lt.s32.totalorder %s1405_s11, %s1398_s29 }
  0x2e   : > { %p1402_p12 = pneg %p1401_p3  ;;  %p1408_p5 = por %p1407_p6, %p1406_p11 }
  0x30   : > { %p1409_p7 = pnand %p1408_p5, %p1402_p12 }
  0x32   : > { %1412 = shalt.err (!%p1409_p7)
}
  0x33   : > { %1321 = dma.hbm_to_vmem [thread:$0]  (!%p1639_p13), %s1648_s5, 128, %s1651_s7, %s1654_s8  }
  0x34   : > { %p196_p9 = scmp.lt.s32.totalorder %s1543_s15, 3  ;;  %s1689_s19 = scalar_lea.hbm %s1884_s0, %s1633_s26 }
  0x35   : > { %p1899_p6 = scmp.ge.s32.totalorder %s1543_s15, 1  ;;  %s148_s30 = scalar_lea.vmem [#allocation2], %s1637_s27 }
  0x36   : > { %s155_s29 = sshll.u32 %s148_s30, 4  ;;  %s145_s5 = scalar_lea.sflag [#allocation3], %s144_s25  ;;  %s156_s29 = int_to_ptr.vmem [resolvable:$true] %s155_s29 }
  0x37   : > { %p1693_p11 = pnand %p1899_p6, %p196_p9  ;;  %s1413_s7 = scalar_lea.hbm %s1689_s19, 128 }
  0x38   : > { %p1414_p12 = scmp.ne.s32.totalorder %s1689_s19, %s1413_s7  ;;  %s1418_s11 = scalar_lea.hbm %s1884_s0, 256 }
  0x39   : > { %s1900_s20 = scalar_select %p1693_p11, 1, 0 }
  0x3a   : > { %p1416_p0 = pnand %p1414_p12, %p1660_p2  ;;  %p1419_p8 = scmp.lt.u32.totalorder %s1689_s19, %s1884_s0 }
  0x3b   : > { %p1420_p10 = scmp.lt.u32.totalorder %s1418_s11, %s1413_s7  ;;  %p1422_p3 = scmp.lt.u32.totalorder %s1413_s7, %s1689_s19 }
  0x3c   : > { %p1417_p4 = pneg %p1416_p0 }
  0x3d   : > { %p1421_p1 = por %p1420_p10, %p1419_p8 }
  0x3f   : > { %p1423_p5 = por %p1422_p3, %p1421_p1 }
  0x41   : > { %p1424_p7 = pnand %p1423_p5, %p1417_p4 }
  0x43   : > { %1427 = shalt.err (!%p1424_p7)
}
  0x44   : > { %s1428_s25 = scalar_lea.vmem %s156_s29, 128  ;;  %s1546_s30 = smov [#allocation2]  }
  0x45   : > { %p1429_p9 = scmp.ne.s32.totalorder %s156_s29, %s1428_s25  ;;  %s1433_s1 = sshll.u32 %s1546_s30, 4  ;;  %s1434_s1 = int_to_ptr.vmem [resolvable:$false] %s1433_s1 }
  0x46   : > { %s1435_s4 = scalar_lea.vmem %s1434_s1, 256  ;;  %p1436_p0 = scmp.lt.s32.totalorder %s156_s29, %s1434_s1 }
  0x47   : > { %p1431_p6 = pnand %p1429_p9, %p1660_p2  ;;  %p1437_p11 = scmp.lt.s32.totalorder %s1435_s4, %s1428_s25 }
  0x49   : > { %p1432_p12 = pneg %p1431_p6  ;;  %p1438_p13 = por %p1437_p11, %p1436_p0 }
  0x4b   : > { %p1439_p8 = pnand %p1438_p13, %p1432_p12 }
  0x4d   : > { %1442 = shalt.err (!%p1439_p8)
}
  0x4e   : > { %p1901_p10 = scmp.ne.s32.totalorder %s1896_s28, 0  ;;  %s1721_s11 = scalar_lea.hbm %s1886_s2, %s1633_s26 }
  0x4f   : > { %s184_s1 = scalar_lea.vmem [#allocation7], %s1637_s27  ;;  %s1443_s17 = scalar_lea.hbm %s1721_s11, 128 }
  0x50   : > { %1318 = dma.hbm_to_vmem [thread:$0]  (!%p1901_p10), %s1689_s19, 128, %s156_s29, %s145_s5  }
  0x51   : > { %s191_s9 = sshll.u32 %s184_s1, 4  ;;  %p1444_p13 = scmp.ne.s32.totalorder %s1721_s11, %s1443_s17  ;;  %s192_s9 = int_to_ptr.vmem [resolvable:$true] %s191_s9 }
  0x52   : > { %s1448_s19 = scalar_lea.hbm %s1886_s2, 256  ;;  %p1449_p1 = scmp.lt.u32.totalorder %s1721_s11, %s1886_s2 }
  0x53   : > { %p1446_p11 = pnand %p1444_p13, %p1660_p2  ;;  %p1450_p3 = scmp.lt.u32.totalorder %s1448_s19, %s1443_s17 }
  0x54   : > { %p1452_p7 = scmp.lt.u32.totalorder %s1443_s17, %s1721_s11 }
  0x55   : > { %p1447_p4 = pneg %p1446_p11  ;;  %p1451_p5 = por %p1450_p3, %p1449_p1 }
  0x57   : > { %p1453_p9 = por %p1452_p7, %p1451_p5 }
  0x59   : > { %p1454_p6 = pnand %p1453_p9, %p1447_p4 }
  0x5b   : > { %1457 = shalt.err (!%p1454_p6)
}
  0x5c   : > { %s1458_s26 = scalar_lea.vmem %s192_s9, 128  ;;  %s1547_s27 = smov [#allocation7]  }
  0x5d   : > { %p1459_p12 = scmp.ne.s32.totalorder %s192_s9, %s1458_s26  ;;  %s1463_s4 = sshll.u32 %s1547_s27, 4  ;;  %s1464_s4 = int_to_ptr.vmem [resolvable:$false] %s1463_s4 }
  0x5e   : > { %s1465_s7 = scalar_lea.vmem %s1464_s4, 256  ;;  %p1466_p13 = scmp.lt.s32.totalorder %s192_s9, %s1464_s4 }
  0x5f   : > { %p1461_p0 = pnand %p1459_p12, %p1660_p2  ;;  %p1467_p11 = scmp.lt.s32.totalorder %s1465_s7, %s1458_s26 }
  0x61   : > { %p1462_p8 = pneg %p1461_p0  ;;  %p1468_p10 = por %p1467_p11, %p1466_p13 }
  0x63   : > { %p1469_p1 = pnand %p1468_p10, %p1462_p8 }
  0x65   : > { %1472 = shalt.err (!%p1469_p1)
}
  0x66   : > { %p1902_p3 = scmp.ne.s32.totalorder %s1896_s28, 0  ;;  %p1903_p4 = scmp.ne.s32.totalorder %s1900_s20, 0 }
  0x67   : > { %s1745_s10 = sand.u32 (!%p1903_p4), 1, %s1535_s13   ;;  %p1904_p2 = scmp.ne.s32.totalorder (!%p1903_p4), %s1893_s22, 0 }
  0x68   : > { %1324 = dma.hbm_to_vmem [thread:$0]  (!%p1902_p3), %s1721_s11, 128, %s192_s9, %s1654_s8  }
  0x69   : > { %200 = sbr.rel (%p1903_p4) target bundleno = 942 (0x3ae), region = 32  ;;  %s1748_s6 = sshll.u32 (!%p1903_p4), %s1745_s10, 3 }
  0x6a   : > { %s203_s1 = scalar_lea.sflag (!%p1903_p4), [#allocation3], %s1745_s10  ;;  %s206_s17 = scalar_lea.vmem (!%p1903_p4), [#allocation2], %s1748_s6 }
  0x70   : > { %1518 = dma.done.wait (%p1904_p2), %s203_s1, 128  }
  0x71   : > { %1520 = vsyncadd (%p1904_p2), %s203_s1, 4294967168  ;;  %s211_s28 = sand.u32 1, %s1598_s16   ;;  %s215_s20 = scalar_lea.vmem [#allocation5], %s1748_s6 }
  0x72   : > { %s212_s8 = scalar_lea.sflag [#allocation6], %s211_s28 }
  0x73   : > { %1522 = dma.done.wait (%p1904_p2), %s212_s8, 256  }
  0x74   : > { %1524 = vsyncadd (%p1904_p2), %s212_s8, 4294967040  ;;  %v264_v0 = vld [vmem:[%s215_s20] sm:$0xff]  ;;  %s224_s11 = scalar_lea.vmem [#allocation7], %s1748_s6  ;;  %v1548_v5 = vmov 0.0   ;;  %vm1549_vm1 = vmmov 0   ;;  %s1550_s22 = smov 120  }
  0x75   : > { %v267_v1 = vmin.f32 %v264_v0, 0.0  ;;  %v266_v3 = vadd.f32 1.0, %v264_v0  ;;  %vm265_vm0 = vcmp.gt.f32.partialorder %v264_v0, 0.0  ;;  %v271_v4 = vld [vmem:[%s224_s11] sm:$0xff]  ;;  %1267 = vmatprep.subr.mxu0 %v1548_v5  ;;  %1269 = vmatprep.mubr.msk.f32.mxu0 %vm1549_vm1, %v1548_v5  ;;  %s1551_s9 = smov 104   ;;  %s1552_s25 = smov 112  }
  0x76   : > { %1268 = vmatpush3.msra.mxu0 %v271_v4  ;;  %1272 = vmatprep.subr.mxu1 %v1548_v5  ;;  %v257_v11 = vld [vmem:[%s206_s17] sm:$0xff]  ;;  %vm578_vm2 = vcmask 130112   ;;  %vm986_vm3 = vcmask 261312   ;;  %vm782_vm4 = vcmask 195712   ;;  %vm304_vm6 = vcmask 64512   ;;  %s1553_s30 = smov 8  }
  0x77   : > { %v268_v2 = vmul.f32 1.442695, %v267_v1  ;;  %1277 = vmatprep.subr.mxu0 %v1548_v5  ;;  %1274 = vmatprep.mubr.msk.f32.mxu1 %vm1549_vm1, %v1548_v5  ;;  %v260_v12 = vmin.f32 %v257_v11, 0.0  ;;  %v259_v24 = vadd.f32 1.0, %v257_v11  ;;  %vm258_vm5 = vcmp.gt.f32.partialorder %v257_v11, 0.0  ;;  %s1554_s19 = smov 16  }
  0x78   : > { %s1555_s29 = smov 24   ;;  %vm1092_vm7 = vcmask 130048   ;;  %s1248_s5 = sshll.u32 %s1598_s16, 7  ;;  %vm1094_vm8 = vcmask 195584   ;;  %vm1096_vm9 = vcmask 261120  }
  0x79   : > { %1371 = vpow2.f32 %v268_v2  ;;  %v261_v16 = vmul.f32 1.442695, %v260_v12  ;;  %s256_s26 = scalar_lea.vmem [#allocation8], %s1748_s6  ;;  %s1840_s1 = scalar_lea.hbm %s1887_s3, %s1248_s5 }
  0x7a   : > { %s1112_s27 = sshll.u32 %s256_s26, 4  ;;  %s1099_s16 = scalar_lea.sflag [#allocation4], %s1745_s10  ;;  %s1842_s27 = int_to_ptr.vmem [resolvable:$true] %s1112_s27 }
  0x7b   : > { %1373 = vpow2.f32 %v261_v16  ;;  %s1473_s6 = scalar_lea.vmem %s1842_s27, 128  ;;  %p1905_p5 = scmp.ne.s32.totalorder %s1894_s23, 0 }
  0x7c   : > { %p1474_p10 = scmp.ne.s32.totalorder %s1842_s27, %s1473_s6  ;;  %s1556_s17 = smov [#allocation8]  }
  0x7d   : > { %s1477_s28 = sshll.u32 %s1556_s17, 4  ;;  %s1478_s28 = int_to_ptr.vmem [resolvable:$false] %s1477_s28 }
  0x7e   : > { %p1475_p7 = pnand %p1474_p10, %p1905_p5  ;;  %s1479_s8 = scalar_lea.vmem %s1478_s28, 256 }
  0x7f   : > { %p1480_p6 = scmp.lt.s32.totalorder %s1842_s27, %s1478_s28  ;;  %p1481_p12 = scmp.lt.s32.totalorder %s1479_s8, %s1473_s6 }
  0x80   : > { %p1476_p9 = pneg %p1475_p7 }
  0x81   : > { %p1482_p0 = por %p1481_p12, %p1480_p6 }
  0x83   : > { %v1372_v6 = vpop.eup %1371  ;;  %p1483_p8 = pnand %p1482_p0, %p1476_p9 }
  0x84   : > { %v1770_v7 = vsel %vm265_vm0, %v266_v3, %v1372_v6 }
  0x85   : > { %466 = vrot.lane.b32.xlu0 %v1770_v7, %s1550_s22  ;;  %875 = vrot.lane.b32.xlu1 %v1770_v7, %s1551_s9  ;;  %v579_v13 = vsel %vm578_vm2, %v1770_v7, 0.0  ;;  %v987_v15 = vsel %vm986_vm3, %v1770_v7, 0.0  ;;  %v783_v23 = vsel %vm782_vm4, %v1770_v7, 0.0  ;;  %v1374_v25 = vpop.eup %1373  ;;  %v378_v50 = vsel %vm304_vm6, %v1770_v7, 0.0 }
  0x86   : > { %v580_v14 = vrot.slane %v579_v13, 4  ;;  %v988_v18 = vrot.slane %v987_v15, 4  ;;  %v784_v27 = vrot.slane %v783_v23, 4  ;;  %v1787_v29 = vsel %vm258_vm5, %v259_v24, %v1374_v25 }
  0x87   : > { %v379_v51 = vrot.slane %v378_v50, 4 }
  0x88   : > { %v581_v17 = vadd.f32 %v580_v14, %v579_v13  ;;  %v989_v20 = vadd.f32 %v988_v18, %v987_v15  ;;  %v785_v31 = vadd.f32 %v784_v27, %v783_v23 }
  0x89   : > { %671 = vrot.lane.b32.xlu0 %v1770_v7, %s1552_s25  ;;  %502 = vrot.lane.b32.xlu1 %v271_v4, %s1550_s22  ;;  %v380_v53 = vadd.f32 %v379_v51, %v378_v50 }
  0x8a   : > { %v582_v19 = vrot.slane %v581_v17, 2  ;;  %v990_v22 = vrot.slane %v989_v20, 2  ;;  %v786_v34 = vrot.slane %v785_v31, 2 }
  0x8b   : > { %v381_v55 = vrot.slane %v380_v53, 2 }
  0x8c   : > { %v583_v21 = vadd.f32 %v582_v19, %v581_v17  ;;  %v991_v28 = vadd.f32 %v990_v22, %v989_v20  ;;  %v787_v36 = vadd.f32 %v786_v34, %v785_v31 }
  0x8d   : > { %706 = vrot.lane.b32.xlu0 %v271_v4, %s1552_s25  ;;  %910 = vrot.lane.b32.xlu1 %v271_v4, %s1551_s9  ;;  %v382_v56 = vadd.f32 %v381_v55, %v380_v53 }
  0x8e   : > { %v584_v26 = vrot.slane %v583_v21, 1  ;;  %v992_v32 = vrot.slane %v991_v28, 1  ;;  %v788_v38 = vrot.slane %v787_v36, 1 }
  0x8f   : > { %v383_v57 = vrot.slane %v382_v56, 1 }
  0x90   : > { %v585_v30 = vadd.f32 %v584_v26, %v583_v21  ;;  %v993_v35 = vadd.f32 %v992_v32, %v991_v28  ;;  %v789_v40 = vadd.f32 %v788_v38, %v787_v36 }
  0x91   : > { %v384_v59 = vadd.f32 %v383_v57, %v382_v56 }
  0x92   : > { %v586_v33 = vmul.f32 %v585_v30, %v1787_v29  ;;  %v994_v37 = vmul.f32 %v993_v35, %v1787_v29  ;;  %v790_v42 = vmul.f32 %v789_v40, %v1787_v29 }
  0x93   : > { %v385_v60 = vmul.f32 %v384_v59, %v1787_v29 }
  0x95   : > { %v386_v62 = vsel %vm304_vm6, %v385_v60, 0.0 }
  0xab   : > { %272 = vxpose.xlu0.b32.start.end [1/1] (short) (narrow) %v1770_v7, 8 }
  0xf7   : > { %v467_v8 = vpop.permute.xlu0 %466  ;;  %v876_v10 = vpop.permute.xlu1 %875 }
  0xf8   : > { %469 = vxpose.xlu1.b32.start.end [1/1] (short) (narrow) %v467_v8, 8 }
  0xfb   : > { %v672_v9 = vpop.permute.xlu0 %671  ;;  %v503_v41 = vpop.permute.xlu1 %502 }
  0xfc   : > { %674 = vxpose.xlu0.b32.start.end [1/1] (short) (narrow) %v672_v9, 8 }
  0xff   : > { %v707_v39 = vpop.permute.xlu0 %706  ;;  %v911_v44 = vpop.permute.xlu1 %910 }
 0x100   : > { %878 = vxpose.xlu0.b32.start.end [1/1] (short) (narrow) %v876_v10, 8 }
 0x116   : > { %799 = vrot.lane.b32.xlu1 %v1787_v29, %s1552_s25 }
 0x11a   : > { %1003 = vrot.lane.b32.xlu1 %v1787_v29, %s1551_s9 }
 0x11e   : > { %588 = vrot.lane.b32.xlu1 %v586_v33, %s1550_s22 }
 0x122   : > { %996 = vrot.lane.b32.xlu1 %v994_v37, %s1551_s9 }
 0x129   : > { %595 = vrot.lane.b32.xlu0 %v1787_v29, %s1550_s22 }
 0x12b   : > { %v288_v43 = vpop.trf.xlu0 }
 0x12c   : > { %1270 = vmatmul.mubr.msk.f32.vlgmr.msra.gmra.mrb[0].mxu0 %vm304_vm6, %v288_v43 }
 0x12d   : > { %1278 = vmatpush3.msra.mxu0 %v503_v41  ;;  %1279 = vmatprep.mubr.msk.f32.mxu0 %vm1549_vm1, %v1548_v5 }
 0x12e   : > { %1287 = vmatprep.subr.mxu0 %v1548_v5  ;;  %792 = vrot.lane.b32.xlu0 %v790_v42, %s1552_s25 }
 0x14d   : > { %387 = vadd.xlane.f32.xlu0 %v386_v62 }
 0x178   : > { %v485_v45 = vpop.trf.xlu1 }
 0x179   : > { %1280 = vmatmul.mubr.msk.f32.vlgmr.msra.gmra.mrb[2].mxu0 %vm304_vm6, %v485_v45 }
 0x17a   : > { %1288 = vmatpush3.msra.mxu0 %v707_v39  ;;  %1289 = vmatprep.mubr.msk.f32.mxu0 %vm1549_vm1, %v1548_v5 }
 0x17b   : > { %1297 = vmatprep.subr.mxu0 %v1548_v5 }
 0x17c   : > { %v690_v46 = vpop.trf.xlu0 }
 0x17d   : > { %1290 = vmatmul.mubr.msk.f32.vlgmr.msra.gmra.mrb[4].mxu0 %vm304_vm6, %v690_v46 }
 0x17e   : > { %1298 = vmatpush3.msra.mxu0 %v911_v44  ;;  %1299 = vmatprep.mubr.msk.f32.mxu0 %vm1549_vm1, %v1548_v5 }
 0x180   : > { %v894_v47 = vpop.trf.xlu0 }
 0x181   : > { %1300 = vmatmul.mubr.msk.f32.vlgmr.msra.gmra.mrb[6].mxu0 %vm304_vm6, %v894_v47 }
 0x188   : > { %v800_v48 = vpop.permute.xlu1 %799 }
 0x18c   : > { %v1004_v49 = vpop.permute.xlu1 %1003 }
 0x190   : > { %v589_v52 = vpop.permute.xlu1 %588 }
 0x191   : > { %v591_v54 = vsel %vm304_vm6, %v589_v52, 0.0 }
 0x192   : > { %592 = vadd.xlane.f32.xlu1 %v591_v54 }
 0x194   : > { %v997_v0 = vpop.permute.xlu1 %996 }
 0x195   : > { %v999_v1 = vsel %vm304_vm6, %v997_v0, 0.0 }
 0x19b   : > { %v596_v58 = vpop.permute.xlu0 %595 }
 0x1a0   : > { %v793_v61 = vpop.permute.xlu0 %792 }
 0x1a1   : > { %v795_v63 = vsel %vm304_vm6, %v793_v61, 0.0 }
 0x1a2   : > { %796 = vadd.xlane.f32.xlu0 %v795_v63 }
 0x1a6   : > { %1000 = vadd.xlane.f32.xlu0 %v999_v1 }
 0x1da   : > { %v388_v11 = vpop.xlane.xlu0 %387 }
 0x1db   : > { %v389_v12 = vadd.f32 1e-06, %v388_v11 }
 0x1dd   : > { %1375 = vrcp.f32 %v389_v12 }
 0x1e7   : > { %v1376_v13 = vpop.eup %1375 }
 0x1ff   : > { %v374_v2 = vpop.f32.mrb[0].mxu0 }
 0x200   : > { %v1271_v3 = vpop.f32.mrb[1].mxu0  ;;  %1273 = vmatpush3.msra.mxu1 %v374_v2 }
 0x201   : > { %1275 = vmatmul.mubr.msk.f32.vlgmr.msra.gmra.mrb[0].mxu1 %vm304_vm6, %v1787_v29  ;;  %1282 = vmatprep.subr.mxu1 %v1548_v5 }
 0x202   : > { %1284 = vmatprep.mubr.msk.f32.mxu1 %vm1549_vm1, %v1548_v5 }
 0x21f   : > { %v593_v17 = vpop.xlane.xlu1 %592 }
 0x220   : > { %v594_v19 = vadd.f32 1e-06, %v593_v17 }
 0x222   : > { %1377 = vrcp.f32 %v594_v19 }
 0x22c   : > { %v1378_v22 = vpop.eup %1377 }
 0x22f   : > { %v797_v18 = vpop.xlane.xlu0 %796 }
 0x230   : > { %v798_v20 = vadd.f32 1e-06, %v797_v18 }
 0x232   : > { %1379 = vrcp.f32 %v798_v20 }
 0x233   : > { %v1001_v21 = vpop.xlane.xlu0 %1000 }
 0x23c   : > { %v1380_v26 = vpop.eup %1379 }
 0x24c   : > { %v574_v4 = vpop.f32.mrb[2].mxu0 }
 0x24d   : > { %v1281_v6 = vpop.f32.mrb[3].mxu0  ;;  %1283 = vmatpush3.msra.mxu1 %v574_v4 }
 0x24e   : > { %1285 = vmatmul.mubr.msk.f32.vlgmr.msra.gmra.mrb[2].mxu1 %vm304_vm6, %v596_v58  ;;  %1292 = vmatprep.subr.mxu1 %v1548_v5 }
 0x24f   : > { %1294 = vmatprep.mubr.msk.f32.mxu1 %vm1549_vm1, %v1548_v5 }
 0x250   : > { %v778_v7 = vpop.f32.mrb[4].mxu0 }
 0x251   : > { %v1291_v8 = vpop.f32.mrb[5].mxu0  ;;  %1293 = vmatpush3.msra.mxu1 %v778_v7 }
 0x252   : > { %1295 = vmatmul.mubr.msk.f32.vlgmr.msra.gmra.mrb[4].mxu1 %vm304_vm6, %v800_v48  ;;  %1302 = vmatprep.subr.mxu1 %v1548_v5 }
 0x253   : > { %1304 = vmatprep.mubr.msk.f32.mxu1 %vm1549_vm1, %v1548_v5  ;;  %v1002_v5 = vadd.f32 1e-06, %v1001_v21 }
 0x254   : > { %v982_v9 = vpop.f32.mrb[6].mxu0 }
 0x255   : > { %v1301_v10 = vpop.f32.mrb[7].mxu0  ;;  %1303 = vmatpush3.msra.mxu1 %v982_v9  ;;  %1381 = vrcp.f32 %v1002_v5 }
 0x256   : > { %1305 = vmatmul.mubr.msk.f32.vlgmr.msra.gmra.mrb[6].mxu1 %vm304_vm6, %v1004_v49 }
 0x25f   : > { %v1382_v30 = vpop.eup %1381 }
 0x2d4   : > { %v459_v14 = vpop.f32.mrb[0].mxu1 }
 0x2d5   : > { %v464_v15 = vmul.f32 %v1376_v13, %v459_v14  ;;  %v1276_v16 = vpop.f32.mrb[1].mxu1 }
 0x321   : > { %v665_v23 = vpop.f32.mrb[2].mxu1 }
 0x322   : > { %v670_v24 = vmul.f32 %v1378_v22, %v665_v23  ;;  %v1286_v25 = vpop.f32.mrb[3].mxu1 }
 0x324   : > { %1080 = vrot.lane.b32.xlu1 %v670_v24, %s1553_s30 }
 0x325   : > { %v869_v27 = vpop.f32.mrb[4].mxu1 }
 0x326   : > { %v874_v28 = vmul.f32 %v1380_v26, %v869_v27  ;;  %v1296_v29 = vpop.f32.mrb[5].mxu1 }
 0x328   : > { %1084 = vrot.lane.b32.xlu0 %v874_v28, %s1554_s19 }
 0x329   : > { %v1073_v31 = vpop.f32.mrb[6].mxu1 }
 0x32a   : > { %v1078_v32 = vmul.f32 %v1382_v30, %v1073_v31  ;;  %v1306_v33 = vpop.f32.mrb[7].mxu1 }
 0x32c   : > { %1088 = vrot.lane.b32.xlu1 %v1078_v32, %s1555_s29 }
 0x396   : > { %v1081_v34 = vpop.permute.xlu1 %1080 }
 0x397   : > { %v1091_v36 = vsel %vm304_vm6, %v464_v15, %v1081_v34 }
 0x39a   : > { %v1085_v35 = vpop.permute.xlu0 %1084 }
 0x39b   : > { %v1093_v37 = vsel %vm1092_vm7, %v1091_v36, %v1085_v35 }
 0x39e   : > { %v1089_v38 = vpop.permute.xlu1 %1088 }
 0x39f   : > { %v1095_v39 = vsel %vm1094_vm8, %v1093_v37, %v1089_v38 }
 0x3a0   : > { %1097 = vst.msk [vmem:[%s256_s26] sm:$0xff] %vm1096_vm9, %v1095_v39 }
 0x3a1   : > { %1486 = shalt.err (!%p1483_p8)
}
 0x3a2   : > { %s1487_s10 = scalar_lea.hbm %s1840_s1, 128  ;;  %s1491_s22 = scalar_lea.hbm %s1887_s3, 256 }
 0x3a3   : > { %p1488_p13 = scmp.ne.s32.totalorder %s1840_s1, %s1487_s10  ;;  %p1492_p3 = scmp.lt.u32.totalorder %s1840_s1, %s1887_s3 }
 0x3a4   : > { %p1493_p4 = scmp.lt.u32.totalorder %s1491_s22, %s1487_s10  ;;  %p1495_p10 = scmp.lt.u32.totalorder %s1487_s10, %s1840_s1 }
 0x3a5   : > { %p1489_p11 = pnand %p1488_p13, %p1905_p5 }
 0x3a6   : > { %p1494_p2 = por %p1493_p4, %p1492_p3 }
 0x3a7   : > { %p1490_p1 = pneg %p1489_p11 }
 0x3a8   : > { %p1496_p7 = por %p1495_p10, %p1494_p2 }
 0x3aa   : > { %p1497_p9 = pnand %p1496_p7, %p1490_p1 }
 0x3ac   : > { %1500 = shalt.err (!%p1497_p9)
}
 0x3ad   : > { %1313 = dma.vmem_to_hbm [thread:$0]  (%p1905_p5), %s1842_s27, 128, %s1840_s1, %s1099_s16  }
 0x3ae PF: > { %s1124_s30 = sand.u32 1, %s1531_s12   ;;  %p1906_p6 = scmp.ne.s32.totalorder %s1895_s24, 0 }
 0x3af   : > { %p1907_p12 = scmp.ge.s32.totalorder %s1543_s15, 2  ;;  %s1125_s19 = scalar_lea.sflag [#allocation4], %s1124_s30 }
 0x3b1   : > { %p1326_p0 = pnand %p1907_p12, %p1906_p6 }
 0x3b3   : > { %1526 = dma.done.wait (!%p1326_p0), %s1125_s19, 128  }
 0x3b4   : > { %1528 = vsyncadd (!%p1326_p0), %s1125_s19, 4294967168  ;;  %p19_p8 = scmp.ge.s32.totalorder %s1602_s18, 4   ;;  %s1908_s12 = smov %s1535_s13 }
 0x3b5   : > { %s1909_s13 = smov %s1539_s14  ;;  %s1910_s14 = smov %s1614_s21 }
 0x3b6   : > { %s1911_s15 = smov %s1602_s18  ;;  %21 = sbr.rel (!%p19_p8) target bundleno = 9 (0x9), region = 101 }
 0x3bd   :  { %1130 = vsyncpa [#allocation3], 1 }
 0x3be   :  { %1132 = vsyncpa [#allocation3 + $0x1], 1 }
 0x3bf   :  { %1133 = vsyncpa [#allocation6], 1 }
 0x3c0   :  { %1135 = vsyncpa [#allocation6 + $0x1], 1 }
 0x3c1   :  { %1136 = vsyncpa [#allocation4], 1 }
 0x3c2   :  { %1138 = vsyncpa [#allocation4 + $0x1], 1 }

</bundles_post_ra>
